<compile_context>
chip_gen: v7x
topology: tpu7x:2x2x1
jax: 0.10.0
libtpu: 0.0.40
codegen_flags: <defaults>
</compile_context>

<pallas_src>
import functools

import jax
import jax.numpy as jnp
from jax.experimental import pallas as pl
from jax.experimental.pallas import tpu as pltpu


def _round_up(n, m):
    return ((n + m - 1) // m) * m


# ----------------------------------------------------------------------------
# Kernel
# ----------------------------------------------------------------------------
def sae_kernel(x_ref, w_ref, b_ref, o_ref, *, n_layers):
    """x_ref: (tb, Dmax) compute_dtype; w_ref: (L, Dmax, Dmax) compute_dtype;
    b_ref: (L, 1, Dmax) f32; o_ref: (tb, Dmax) out_dtype."""
    compute_dtype = x_ref.dtype
    h = x_ref[...]
    for k in range(n_layers):                       # statically unrolled
        # MXU matmul with f32 accumulation.
        h = jnp.dot(h, w_ref[k], preferred_element_type=jnp.float32)
        # Bias add + ReLU in f32 on the VPU.
        h = jnp.maximum(h + b_ref[k], 0.0)
        if k + 1 < n_layers:
            # Feed the next matmul in the MXU-native compute dtype.
            h = h.astype(compute_dtype)
    o_ref[...] = h.astype(o_ref.dtype)


# ----------------------------------------------------------------------------
# One-time parameter preparation (pad to lane-dense 128 and stack)
# ----------------------------------------------------------------------------
def prepare_params(params, *, compute_dtype=jnp.float32):
    """params: list of (W[in,out], b[out]).  Returns (w_stack, b_stack).

    Every feature width is zero-padded to Dmax = max(round_up(dim, 128)).
    Zero-padded W rows/cols + relu(0)=0 keep the real outputs bit-exact; the
    padded output lanes are sliced off in the forward wrapper.
    """
    dims = [params[0][0].shape[0]] + [w.shape[1] for (w, _) in params]
    dmax = max(_round_up(d, 128) for d in dims)
    w_stack = jnp.stack([
        jnp.pad(w, ((0, dmax - w.shape[0]), (0, dmax - w.shape[1])))
        .astype(compute_dtype)
        for (w, _) in params
    ])
    b_stack = jnp.stack([
        jnp.pad(b, (0, dmax - b.shape[0])).astype(jnp.float32).reshape(1, dmax)
        for (_, b) in params
    ])
    return w_stack, b_stack


# ----------------------------------------------------------------------------
# Tile selection
# ----------------------------------------------------------------------------
def _choose_tile_b(B, tile_b_max, gran):
    """Largest tile <= tile_b_max (sublane-granularity aligned) that still gives
    >= 4 grid steps (2 per TensorCore on v7x) when the batch allows it."""
    tb = _round_up(max(gran, min(tile_b_max, B)), gran)
    target_steps = 4 if B >= 4 * gran else (2 if B >= 2 * gran else 1)
    while tb > gran and -(-B // tb) < target_steps:
        tb = _round_up(max(gran, tb // 2), gran)
    return tb


# ----------------------------------------------------------------------------
# Forward wrapper (jitted; params already prepared/stacked)
# ----------------------------------------------------------------------------
@functools.partial(jax.jit, static_argnames=("out_dim", "tile_b", "out_dtype"))
def stacked_autoencoder(x, w_stack, b_stack, *, out_dim, tile_b=1024,
                        out_dtype=jnp.float32):
    """x: [B, D0].  w_stack: [L, Dmax, Dmax].  b_stack: [L, 1, Dmax] (f32)."""
    B, D0 = x.shape
    n_layers, dmax, _ = w_stack.shape
    compute_dtype = w_stack.dtype

    # Sub-32-bit compute packs sublanes in pairs -> align tb to 16 for bf16.
    gran = 16 if jnp.dtype(compute_dtype).itemsize < 4 else 8
    tb = _choose_tile_b(B, tile_b, gran)
    Bp = _round_up(B, tb)

    xp = x.astype(compute_dtype)
    if (Bp, dmax) != (B, D0):
        xp = jnp.pad(xp, ((0, Bp - B), (0, dmax - D0)))

    grid = (Bp // tb,)

    out_padded = pl.pallas_call(
        functools.partial(sae_kernel, n_layers=n_layers),
        out_shape=jax.ShapeDtypeStruct((Bp, dmax), out_dtype),
        grid_spec=pltpu.PrefetchScalarGridSpec(
            num_scalar_prefetch=0,
            grid=grid,
            in_specs=[
                # x: tiled over the batch, auto-pipelined (double buffered).
                pl.BlockSpec((tb, dmax), lambda i: (i, 0)),
                # stacked weights / biases: small, fully VMEM-resident.
                pl.BlockSpec(memory_space=pltpu.MemorySpace.VMEM),
                pl.BlockSpec(memory_space=pltpu.MemorySpace.VMEM),
            ],
            out_specs=pl.BlockSpec((tb, dmax), lambda i: (i, 0)),
        ),
        compiler_params=pltpu.CompilerParams(
            dimension_semantics=("parallel",)),
    )(xp, w_stack, b_stack)

    # Slice away batch padding and zero-padded output lanes.
    return out_padded[:B, :out_dim]


# ----------------------------------------------------------------------------
# Reference + synthetic init
# ----------------------------------------------------------------------------
def _ref_forward(x, params):
    h = x
    for w, b in params:
        h = jnp.maximum(h @ w + b, 0.0)
    return h


def make_params(key, dims):
    """Deterministic synthetic init: Linear layers dims[k] -> dims[k+1]."""
    params = []
    for k in range(len(dims) - 1):
        key, kw, kb = jax.random.split(key, 3)
        bound = 1.0 / jnp.sqrt(dims[k])
        w = jax.random.uniform(kw, (dims[k], dims[k + 1]),
                               minval=-bound, maxval=bound, dtype=jnp.float32)
        b = jax.random.uniform(kb, (dims[k + 1],),
                               minval=-bound, maxval=bound, dtype=jnp.float32)
        params.append((w, b))
    return params


if __name__ == "__main__":
    key = jax.random.PRNGKey(0)
    kx, kp = jax.random.split(key)

    # Small shapes: 512 rows of 128 features, encoder widths 64 -> 32 -> 16 -> 8.
    B = 512
    dims = [128, 64, 32, 16, 8]

    x = jax.random.normal(kx, (B, dims[0]), dtype=jnp.float32)
    params = make_params(kp, dims)

    ref = _ref_forward(x, params)

    # ---- f32 path (matches the PyTorch module's numerics) -------------------
    w32, b32 = prepare_params(params, compute_dtype=jnp.float32)
    out = stacked_autoencoder(x, w32, b32, out_dim=dims[-1],
                              tile_b=1024, out_dtype=jnp.float32)
    out = jax.block_until_ready(out)
    assert out.shape == (B, dims[-1])
    assert jnp.allclose(out, ref, atol=1e-5, rtol=1e-5), "f32 mismatch vs reference"

    # ---- bf16 compute + bf16 output path (halves x and out HBM bytes) -------
    wbf, bbf = prepare_params(params, compute_dtype=jnp.bfloat16)
    out_bf16 = stacked_autoencoder(x, wbf, bbf, out_dim=dims[-1],
                                   tile_b=1024, out_dtype=jnp.bfloat16)
    out_bf16 = jax.block_until_ready(out_bf16)
    assert out_bf16.shape == (B, dims[-1])
    assert out_bf16.dtype == jnp.bfloat16
    assert jnp.allclose(out_bf16.astype(jnp.float32), ref,
                        atol=5e-2, rtol=5e-2), "bf16 mismatch vs reference"

    print("KERNEL_OK")
</pallas_src>

<mosaic_0001>
module attributes {stable_mosaic.version = 11 : i64} {
  func.func @sae_kernel(%arg0: i32, %arg1: memref<128x128xf32, #tpu.memory_space<vmem>>, %arg2: memref<4x128x128xf32, #tpu.memory_space<vmem>>, %arg3: memref<4x1x128xf32, #tpu.memory_space<vmem>>, %arg4: memref<128x128xf32, #tpu.memory_space<vmem>>) attributes {dimension_semantics = [#tpu.dimension_semantics<parallel>], iteration_bounds = array<i64: 4>, scalar_prefetch = 0 : i64, scratch_operands = 0 : i64, tpu.core_type = #tpu.core_type<tc>, window_params = [{transform_indices = @transform_0, window_bounds = array<i64: 128, 128>}, {pipeline_mode = #tpu.pipeline_mode<synchronous>, transform_indices = @transform_1, window_bounds = array<i64: 4, 128, 128>}, {pipeline_mode = #tpu.pipeline_mode<synchronous>, transform_indices = @transform_2, window_bounds = array<i64: 4, 1, 128>}, {transform_indices = @transform_3, window_bounds = array<i64: 128, 128>}]} {
    %c0 = arith.constant 0 : index
    %c0_0 = arith.constant 0 : index
    %0 = vector.load %arg1[%c0, %c0_0] : memref<128x128xf32, #tpu.memory_space<vmem>>, vector<128x128xf32>
    %c0_1 = arith.constant 0 : index
    %c0_2 = arith.constant 0 : index
    %c0_3 = arith.constant 0 : index
    %1 = vector.load %arg2[%c0_1, %c0_2, %c0_3] : memref<4x128x128xf32, #tpu.memory_space<vmem>>, vector<1x128x128xf32>
    %2 = vector.shape_cast %1 : vector<1x128x128xf32> to vector<128x128xf32>
    %cst = arith.constant dense<0.000000e+00> : vector<128x128xf32>
    %3 = tpu.matmul %0, %2, %cst {dimension_numbers = #tpu.dot_dimension_numbers<[1], [0], [0], [1], [0, 0, 1, 1], [], []>} : vector<128x128xf32>, vector<128x128xf32>, vector<128x128xf32> -> vector<128x128xf32>
    %c0_4 = arith.constant 0 : index
    %c0_5 = arith.constant 0 : index
    %c0_6 = arith.constant 0 : index
    %4 = vector.load %arg3[%c0_4, %c0_5, %c0_6] : memref<4x1x128xf32, #tpu.memory_space<vmem>>, vector<1x1x128xf32>
    %5 = vector.shape_cast %4 : vector<1x1x128xf32> to vector<1x128xf32>
    %6 = vector.broadcast %5 : vector<1x128xf32> to vector<128x128xf32>
    %7 = arith.addf %3, %6 : vector<128x128xf32>
    %cst_7 = arith.constant 0.000000e+00 : f32
    %8 = vector.broadcast %cst_7 : f32 to vector<128x128xf32>
    %9 = arith.maximumf %7, %8 : vector<128x128xf32>
    %c1 = arith.constant 1 : index
    %c0_8 = arith.constant 0 : index
    %c0_9 = arith.constant 0 : index
    %10 = vector.load %arg2[%c1, %c0_8, %c0_9] : memref<4x128x128xf32, #tpu.memory_space<vmem>>, vector<1x128x128xf32>
    %11 = vector.shape_cast %10 : vector<1x128x128xf32> to vector<128x128xf32>
    %cst_10 = arith.constant dense<0.000000e+00> : vector<128x128xf32>
    %12 = tpu.matmul %9, %11, %cst_10 {dimension_numbers = #tpu.dot_dimension_numbers<[1], [0], [0], [1], [0, 0, 1, 1], [], []>} : vector<128x128xf32>, vector<128x128xf32>, vector<128x128xf32> -> vector<128x128xf32>
    %c1_11 = arith.constant 1 : index
    %c0_12 = arith.constant 0 : index
    %c0_13 = arith.constant 0 : index
    %13 = vector.load %arg3[%c1_11, %c0_12, %c0_13] : memref<4x1x128xf32, #tpu.memory_space<vmem>>, vector<1x1x128xf32>
    %14 = vector.shape_cast %13 : vector<1x1x128xf32> to vector<1x128xf32>
    %15 = vector.broadcast %14 : vector<1x128xf32> to vector<128x128xf32>
    %16 = arith.addf %12, %15 : vector<128x128xf32>
    %cst_14 = arith.constant 0.000000e+00 : f32
    %17 = vector.broadcast %cst_14 : f32 to vector<128x128xf32>
    %18 = arith.maximumf %16, %17 : vector<128x128xf32>
    %c2 = arith.constant 2 : index
    %c0_15 = arith.constant 0 : index
    %c0_16 = arith.constant 0 : index
    %19 = vector.load %arg2[%c2, %c0_15, %c0_16] : memref<4x128x128xf32, #tpu.memory_space<vmem>>, vector<1x128x128xf32>
    %20 = vector.shape_cast %19 : vector<1x128x128xf32> to vector<128x128xf32>
    %cst_17 = arith.constant dense<0.000000e+00> : vector<128x128xf32>
    %21 = tpu.matmul %18, %20, %cst_17 {dimension_numbers = #tpu.dot_dimension_numbers<[1], [0], [0], [1], [0, 0, 1, 1], [], []>} : vector<128x128xf32>, vector<128x128xf32>, vector<128x128xf32> -> vector<128x128xf32>
    %c2_18 = arith.constant 2 : index
    %c0_19 = arith.constant 0 : index
    %c0_20 = arith.constant 0 : index
    %22 = vector.load %arg3[%c2_18, %c0_19, %c0_20] : memref<4x1x128xf32, #tpu.memory_space<vmem>>, vector<1x1x128xf32>
    %23 = vector.shape_cast %22 : vector<1x1x128xf32> to vector<1x128xf32>
    %24 = vector.broadcast %23 : vector<1x128xf32> to vector<128x128xf32>
    %25 = arith.addf %21, %24 : vector<128x128xf32>
    %cst_21 = arith.constant 0.000000e+00 : f32
    %26 = vector.broadcast %cst_21 : f32 to vector<128x128xf32>
    %27 = arith.maximumf %25, %26 : vector<128x128xf32>
    %c3 = arith.constant 3 : index
    %c0_22 = arith.constant 0 : index
    %c0_23 = arith.constant 0 : index
    %28 = vector.load %arg2[%c3, %c0_22, %c0_23] : memref<4x128x128xf32, #tpu.memory_space<vmem>>, vector<1x128x128xf32>
    %29 = vector.shape_cast %28 : vector<1x128x128xf32> to vector<128x128xf32>
    %cst_24 = arith.constant dense<0.000000e+00> : vector<128x128xf32>
    %30 = tpu.matmul %27, %29, %cst_24 {dimension_numbers = #tpu.dot_dimension_numbers<[1], [0], [0], [1], [0, 0, 1, 1], [], []>} : vector<128x128xf32>, vector<128x128xf32>, vector<128x128xf32> -> vector<128x128xf32>
    %c3_25 = arith.constant 3 : index
    %c0_26 = arith.constant 0 : index
    %c0_27 = arith.constant 0 : index
    %31 = vector.load %arg3[%c3_25, %c0_26, %c0_27] : memref<4x1x128xf32, #tpu.memory_space<vmem>>, vector<1x1x128xf32>
    %32 = vector.shape_cast %31 : vector<1x1x128xf32> to vector<1x128xf32>
    %33 = vector.broadcast %32 : vector<1x128xf32> to vector<128x128xf32>
    %34 = arith.addf %30, %33 : vector<128x128xf32>
    %cst_28 = arith.constant 0.000000e+00 : f32
    %35 = vector.broadcast %cst_28 : f32 to vector<128x128xf32>
    %36 = arith.maximumf %34, %35 : vector<128x128xf32>
    %c0_29 = arith.constant 0 : index
    %c0_30 = arith.constant 0 : index
    %37 = vector.load %arg4[%c0_29, %c0_30] : memref<128x128xf32, #tpu.memory_space<vmem>>, vector<128x128xf32>
    tpu.vector_store %arg4[%c0_29, %c0_30], %36 {strides = array<i32>} : memref<128x128xf32, #tpu.memory_space<vmem>>, vector<128x128xf32>,
    return
  }
  func.func @transform_0(%arg0: i32) -> (i32, i32) {
    %c0_i32 = arith.constant 0 : i32
    %c0_i32_0 = arith.constant 0 : i32
    return %arg0, %c0_i32 : i32, i32
  }
  func.func @transform_1(%arg0: i32) -> (i32, i32, i32) {
    %c0_i32 = arith.constant 0 : i32
    %c0_i32_0 = arith.constant 0 : i32
    %c0_i32_1 = arith.constant 0 : i32
    %c0_i32_2 = arith.constant 0 : i32
    return %c0_i32, %c0_i32_0, %c0_i32_1 : i32, i32, i32
  }
  func.func @transform_2(%arg0: i32) -> (i32, i32, i32) {
    %c0_i32 = arith.constant 0 : i32
    %c0_i32_0 = arith.constant 0 : i32
    %c0_i32_1 = arith.constant 0 : i32
    %c0_i32_2 = arith.constant 0 : i32
    return %c0_i32, %c0_i32_0, %c0_i32_1 : i32, i32, i32
  }
  func.func @transform_3(%arg0: i32) -> (i32, i32) {
    %c0_i32 = arith.constant 0 : i32
    %c0_i32_0 = arith.constant 0 : i32
    return %arg0, %c0_i32 : i32, i32
  }
}

</mosaic_0001>

<bundles_post_ra>
// kernel: stacked_autoencoder.1
= control target key start
LH: loop header
LB: loop body
LE: loop exit
PB: predicated region body
PF: predicated region fallthrough
CT: control target
= control target key end

     0   :  { %8 = vsyncpa [#allocation3], 0  ;;  %s1935_s0 = inlined_call_operand.hbm [shape: f32[512,128], index: 0, kind: input, shape index: {}]   ;;  %s1936_s1 = inlined_call_operand.hbm [shape: f32[4,128,128], index: 1, kind: input, shape index: {}]   ;;  %s1937_s2 = inlined_call_operand.vmem [shape: f32[4,1,128], index: 2, kind: input, shape index: {}]   ;;  %s1938_s3 = inlined_call_operand.vmem [shape: f32[512,128], index: 3, kind: output, shape index: {}]  }
   0x1   :  { %10 = vsyncpa [#allocation3 + $0x1], 0 }
   0x2   :  { %11 = vsyncpa [#allocation5], 0  ;;  %s1736_s12 = smov 0   ;;  %s1738_s13 = smov 0  }
   0x3   :  { %s1740_s14 = smov 0   ;;  %s1742_s15 = smov 0  }
   0x4 LB: > { %s1059_s16 = sadd.s32 4294967295, %s1710_s15   ;;  %p37_p0 = scmp.ne.s32.totalorder %s1702_s13, %s1698_s12  ;;  %s1710_s15 = sphi %s1742_s15, %s1954_s15   ;;  %s1706_s14 = sphi %s1740_s14, %s1953_s14   ;;  %s1702_s13 = sphi %s1738_s13, %s1952_s13   ;;  %s1698_s12 = sphi %s1736_s12, %s1951_s12  }
   0x5   : > { %p1758_p1 = scmp.eq.s32.totalorder %s1059_s16, 0  ;;  %p1061_p2 = scmp.ge.s32.totalorder %s1710_s15, 1 }
   0x6   : > { %p116_p3 = scmp.lt.s32.totalorder %s1710_s15, 5  ;;  %s1712_s20 = smov [#allocation4]  }
   0x7   : > { %s1943_s17 = scalar_select %p1758_p1, 1, 0 }
   0x8   : > { %p1766_p4 = por %p1758_p1, %p37_p0  ;;  %p1770_p5 = pnand %p1061_p2, %p116_p3 }
   0x9   : > { %s128_s21 = sshll.u32 %s1712_s20, 4  ;;  %s1783_s23 = sadd.s32 1, %s1710_s15   ;;  %s129_s21 = int_to_ptr.vmem [resolvable:$true] %s128_s21 }
   0xa   : > { %s1944_s18 = scalar_select %p1766_p4, 1, 0 }
   0xb   : > { %s1945_s19 = scalar_select %p1770_p5, 1, 0 }
   0xc   : > { %p1568_p6 = pneg %p1770_p5  ;;  %s24_s24 = sadd.s32 1, %s1706_s14 }
   0xd   : > { %s21_s25 = ssub.s32 %s1710_s15, %s1783_s23  ;;  %s1614_s28 = scalar_lea.hbm %s1936_s1, 8192 }
   0xe   : > { %p1778_p7 = pnand %p1568_p6, %p1758_p1  ;;  %p1615_p8 = scmp.ne.s32.totalorder %s1936_s1, %s1614_s28 }
   0xf   : > { %p1621_p12 = scmp.lt.u32.totalorder %s1614_s28, %s1936_s1 }
  0x10   : > { %p1616_p9 = pneg %p1778_p7 }
  0x12   : > { %p1617_p10 = pnand %p1616_p9, %p1615_p8 }
  0x14   : > { %p1618_p11 = pneg %p1617_p10 }
  0x16   : > { %p1623_p13 = pnand %p1621_p12, %p1618_p11 }
  0x18   : > { %1626 = shalt.err (!%p1623_p13)
}
  0x19   : > { %s1627_s6 = scalar_lea.vmem %s129_s21, 8192  ;;  %p1635_p6 = scmp.lt.s32.totalorder %s129_s21, %s129_s21 }
  0x1a   : > { %p1628_p0 = scmp.ne.s32.totalorder %s129_s21, %s1627_s6  ;;  %p1636_p1 = scmp.lt.s32.totalorder %s1627_s6, %s1627_s6 }
  0x1c   : > { %p1630_p2 = pnand %p1628_p0, %p1616_p9  ;;  %p1637_p4 = por %p1636_p1, %p1635_p6 }
  0x1e   : > { %p1631_p3 = pneg %p1630_p2 }
  0x20   : > { %p1638_p5 = pnand %p1637_p4, %p1631_p3 }
  0x22   : > { %1641 = shalt.err (!%p1638_p5)
}
  0x23   : > { %s1713_s7 = smov 128   ;;  %s1714_s8 = smov 8  }
  0x24   : > { %1571 = dma.hbm_to_vmem [thread:$0]  (!%p1778_p7), %s1936_s1, 8192, %s129_s21, [#allocation5], %s1713_s7, %s1713_s7, %s1714_s8  }
  0x25   : > { %p22_p1 = scmp.eq.s32.totalorder %s21_s25, 0  ;;  %p31_p4 = scmp.ne.s32.totalorder %s1706_s14, %s1702_s13 }
  0x26   : > { %p32_p5 = scmp.eq.s32.totalorder %s1710_s15, 0  ;;  %p1577_p8 = scmp.lt.s32.totalorder %s1710_s15, 4 }
  0x27   : > { %s1812_s11 = scalar_select %p22_p1, %s1706_s14, %s24_s24  }
  0x28   : > { %p33_p9 = por %p32_p5, %p31_p4  ;;  %s145_s12 = sand.u32 1, %s1706_s14  }
  0x29   : > { %s1064_s20 = sshll.u32 %s145_s12, 7  ;;  %s1081_s26 = sshll.u32 %s1710_s15, 11 }
  0x2a   : > { %s1819_s22 = scalar_lea.hbm %s1935_s0, %s1081_s26  ;;  %s149_s21 = scalar_lea.vmem [#allocation2], %s1064_s20 }
  0x2b   : > { %s156_s25 = sshll.u32 %s149_s21, 4  ;;  %p1823_p7 = pnand %p1577_p8, %p33_p9  ;;  %s1821_s25 = int_to_ptr.vmem [resolvable:$true] %s156_s25 }
  0x2c   : > { %s1827_s29 = scalar_lea.sflag [#allocation3], %s145_s12  ;;  %s1642_s30 = scalar_lea.hbm %s1819_s22, 2048 }
  0x2d   : > { %p1643_p10 = scmp.ne.s32.totalorder %s1819_s22, %s1642_s30  ;;  %p1644_p11 = pneg %p1823_p7 }
  0x2e   : > { %s1647_s6 = scalar_lea.hbm %s1935_s0, 8192  ;;  %p1648_p0 = scmp.lt.u32.totalorder %s1819_s22, %s1935_s0 }
  0x2f   : > { %p1645_p12 = pnand %p1644_p11, %p1643_p10  ;;  %p1649_p2 = scmp.lt.u32.totalorder %s1647_s6, %s1642_s30 }
  0x30   : > { %p1651_p6 = scmp.lt.u32.totalorder %s1642_s30, %s1819_s22 }
  0x31   : > { %p1646_p13 = pneg %p1645_p12  ;;  %p1650_p3 = por %p1649_p2, %p1648_p0 }
  0x33   : > { %p1652_p1 = por %p1651_p6, %p1650_p3 }
  0x35   : > { %p1653_p4 = pnand %p1652_p1, %p1646_p13 }
  0x37   : > { %1656 = shalt.err (!%p1653_p4)
}
  0x38   : > { %s1657_s12 = scalar_lea.vmem %s1821_s25, 2048  ;;  %s1715_s20 = smov [#allocation2]  }
  0x39   : > { %p1658_p5 = scmp.ne.s32.totalorder %s1821_s25, %s1657_s12  ;;  %s1662_s26 = sshll.u32 %s1715_s20, 4  ;;  %s1663_s26 = int_to_ptr.vmem [resolvable:$false] %s1662_s26 }
  0x3a   : > { %s1664_s27 = scalar_lea.vmem %s1663_s26, 4096  ;;  %p1665_p10 = scmp.lt.s32.totalorder %s1821_s25, %s1663_s26 }
  0x3b   : > { %p1660_p8 = pnand %p1658_p5, %p1644_p11  ;;  %p1666_p12 = scmp.lt.s32.totalorder %s1664_s27, %s1657_s12 }
  0x3d   : > { %p1661_p9 = pneg %p1660_p8  ;;  %p1667_p0 = por %p1666_p12, %p1665_p10 }
  0x3f   : > { %p1668_p2 = pnand %p1667_p0, %p1661_p9 }
  0x41   : > { %1671 = shalt.err (!%p1668_p2)
}
  0x42   : > { %1575 = dma.hbm_to_vmem [thread:$0]  (!%p1823_p7), %s1819_s22, 2048, %s1821_s25, %s1827_s29, %s1713_s7, %s1713_s7, %s1714_s8  }
  0x43   : > { %p1948_p11 = scmp.ne.s32.totalorder %s1945_s19, 0 }
  0x44   : > { %s170_s28 = sand.u32 (!%p1948_p11), 1, %s1702_s13   ;;  %p1949_p13 = scmp.ne.s32.totalorder (!%p1948_p11), %s1944_s18, 0 }
  0x45   : > { %168 = sbr.rel (%p1948_p11) target bundleno = 1015 (0x3f7), region = 32  ;;  %s1068_s21 = sshll.u32 (!%p1948_p11), %s170_s28, 7 }
  0x46   : > { %s171_s30 = scalar_lea.sflag (!%p1948_p11), [#allocation3], %s170_s28  ;;  %s1861_s4 = scalar_lea.vmem (!%p1948_p11), [#allocation2], %s1068_s21 }
  0x4c   : > { %1689 = dma.done.wait (%p1949_p13), %s171_s30, 2048  }
  0x4d   : > { %1691 = vsyncadd (%p1949_p13), %s171_s30, 4294965248  ;;  %p1950_p3 = scmp.ne.s32.totalorder %s1943_s17, 0 }
  0x4f   : > { %1693 = dma.done.wait (%p1950_p3), [#allocation5], 8192  }
  0x50   : > { %1695 = vsyncadd (%p1950_p3), [#allocation5], 4294959104  ;;  %v224_v0 = vld [vmem:[#allocation4] sm:$0xff]  ;;  %v225_v1 = vld [vmem:[#allocation4 + $0x8] sm:$0xff]  ;;  %s1070_s25 = sshll.u32 %s1059_s16, 4 }
  0x51   : > { %v226_v2 = vld [vmem:[#allocation4 + $0x10] sm:$0xff]  ;;  %v1434_v3 = vpack.c.bf16 %v225_v1, %v224_v0  ;;  %v227_v4 = vld [vmem:[#allocation4 + $0x18] sm:$0xff]  ;;  %v228_v6 = vld [vmem:[#allocation4 + $0x20] sm:$0xff]  ;;  %p203_p7 = scmp.lt.s32.totalorder %s1070_s25, 63 }
  0x52   : > { %v1438_v5 = vpack.c.bf16 %v227_v4, %v226_v2  ;;  %v229_v7 = vld [vmem:[#allocation4 + $0x28] sm:$0xff]  ;;  %v208_v9 = vld [vmem:[%s1861_s4] sm:$0xff]  ;;  %v230_v10 = vld [vmem:[#allocation4 + $0x30] sm:$0xff] }
  0x53   : > { %1435 = vmatprep.subr.bf16.mxu0 %v1434_v3  ;;  %v1442_v8 = vpack.c.bf16 %v229_v7, %v228_v6  ;;  %v231_v11 = vld [vmem:[#allocation4 + $0x38] sm:$0xff]  ;;  %1242 = vmatprep.mubr.f32.mxu0 %v208_v9  ;;  %v232_v13 = vld [vmem:[#allocation4 + $0x40] sm:$0xff]  ;;  %v233_v14 = vld [vmem:[#allocation4 + $0x48] sm:$0xff]  ;;  %s1956_s25 = smov (!%p203_p7, %s1070_s25), 63 }
  0x54   : > { %1437 = vmatpush3.bf16.msra.mxu0 %v1434_v3  ;;  %v1446_v12 = vpack.c.bf16 %v231_v11, %v230_v10  ;;  %v409_v15 = vld [vmem:[#allocation4 + $0x80] sm:$0xff]  ;;  %v410_v16 = vld [vmem:[#allocation4 + $0x88] sm:$0xff]  ;;  %v411_v17 = vld [vmem:[#allocation4 + $0x90] sm:$0xff]  ;;  %v1450_v21 = vpack.c.bf16 %v233_v14, %v232_v13  ;;  %s1071_s5 = sshll.u32 %s1956_s25, 3 }
  0x55   : > { %1439 = vmatprep.subr.bf16.mxu0 %v1438_v5  ;;  %v412_v18 = vld [vmem:[#allocation4 + $0x98] sm:$0xff]  ;;  %v1466_v19 = vpack.c.bf16 %v410_v16, %v409_v15  ;;  %v413_v22 = vld [vmem:[#allocation4 + $0xa0] sm:$0xff]  ;;  %v414_v23 = vld [vmem:[#allocation4 + $0xa8] sm:$0xff]  ;;  %s1904_s10 = scalar_lea.vmem %s1938_s3, %s1071_s5 }
  0x56   : > { %v1470_v20 = vpack.c.bf16 %v412_v18, %v411_v17  ;;  %v234_v24 = vld [vmem:[#allocation4 + $0x50] sm:$0xff]  ;;  %v235_v25 = vld [vmem:[#allocation4 + $0x58] sm:$0xff]  ;;  %v1474_v26 = vpack.c.bf16 %v414_v23, %v413_v22  ;;  %v236_v30 = vld [vmem:[#allocation4 + $0x60] sm:$0xff] }
  0x57   : > { %1467 = vmatprep.subr.bf16.mxu1 %v1466_v19  ;;  %v1454_v27 = vpack.c.bf16 %v235_v25, %v234_v24  ;;  %v415_v28 = vld [vmem:[#allocation4 + $0xb0] sm:$0xff]  ;;  %v416_v29 = vld [vmem:[#allocation4 + $0xb8] sm:$0xff]  ;;  %v237_v31 = vld [vmem:[#allocation4 + $0x68] sm:$0xff] }
  0x58   : > { %1441 = vmatpush3.bf16.msra.mxu0 %v1438_v5  ;;  %1469 = vmatpush3.bf16.msra.mxu1 %v1466_v19  ;;  %v1478_v32 = vpack.c.bf16 %v416_v29, %v415_v28  ;;  %v1458_v33 = vpack.c.bf16 %v237_v31, %v236_v30  ;;  %v417_v34 = vld [vmem:[#allocation4 + $0xc0] sm:$0xff]  ;;  %v418_v35 = vld [vmem:[#allocation4 + $0xc8] sm:$0xff]  ;;  %v238_v36 = vld [vmem:[#allocation4 + $0x70] sm:$0xff] }
  0x59   : > { %1443 = vmatprep.subr.bf16.mxu0 %v1442_v8  ;;  %1471 = vmatprep.subr.bf16.mxu1 %v1470_v20  ;;  %v239_v37 = vld [vmem:[#allocation4 + $0x78] sm:$0xff]  ;;  %v1482_v38 = vpack.c.bf16 %v418_v35, %v417_v34  ;;  %v419_v40 = vld [vmem:[#allocation4 + $0xd0] sm:$0xff]  ;;  %v421_v43 = vld [vmem:[#allocation4 + $0xe0] sm:$0xff] }
  0x5a   : > { %v1462_v39 = vpack.c.bf16 %v239_v37, %v238_v36  ;;  %v420_v41 = vld [vmem:[#allocation4 + $0xd8] sm:$0xff]  ;;  %v422_v44 = vld [vmem:[#allocation4 + $0xe8] sm:$0xff]  ;;  %v210_v47 = vld [vmem:[%s1861_s4 + $0x10] sm:$0xff] }
  0x5b   : > { %v1486_v42 = vpack.c.bf16 %v420_v41, %v419_v40  ;;  %v209_v45 = vld [vmem:[%s1861_s4 + $0x8] sm:$0xff]  ;;  %v1490_v46 = vpack.c.bf16 %v422_v44, %v421_v43  ;;  %v211_v48 = vld [vmem:[%s1861_s4 + $0x18] sm:$0xff]  ;;  %v212_v49 = vld [vmem:[%s1861_s4 + $0x20] sm:$0xff] }
  0x5c   : > { %1445 = vmatpush3.bf16.msra.mxu0 %v1442_v8  ;;  %1473 = vmatpush3.bf16.msra.mxu1 %v1470_v20  ;;  %v213_v50 = vld [vmem:[%s1861_s4 + $0x28] sm:$0xff]  ;;  %v214_v51 = vld [vmem:[%s1861_s4 + $0x30] sm:$0xff]  ;;  %v215_v52 = vld [vmem:[%s1861_s4 + $0x38] sm:$0xff] }
  0x5d   : > { %1447 = vmatprep.subr.bf16.mxu0 %v1446_v12  ;;  %1475 = vmatprep.subr.bf16.mxu1 %v1474_v26  ;;  %v216_v53 = vld [vmem:[%s1861_s4 + $0x40] sm:$0xff]  ;;  %v217_v54 = vld [vmem:[%s1861_s4 + $0x48] sm:$0xff]  ;;  %v218_v55 = vld [vmem:[%s1861_s4 + $0x50] sm:$0xff] }
  0x5e   : > { %v219_v56 = vld [vmem:[%s1861_s4 + $0x58] sm:$0xff]  ;;  %v220_v57 = vld [vmem:[%s1861_s4 + $0x60] sm:$0xff]  ;;  %v221_v58 = vld [vmem:[%s1861_s4 + $0x68] sm:$0xff] }
  0x5f   : > { %v222_v59 = vld [vmem:[%s1861_s4 + $0x70] sm:$0xff]  ;;  %v223_v60 = vld [vmem:[%s1861_s4 + $0x78] sm:$0xff]  ;;  %v595_v0 = vld [vmem:[#allocation4 + $0x100] sm:$0xff] }
  0x60   : > { %1449 = vmatpush3.bf16.msra.mxu0 %v1446_v12  ;;  %1477 = vmatpush3.bf16.msra.mxu1 %v1474_v26  ;;  %v423_v61 = vld [vmem:[#allocation4 + $0xf0] sm:$0xff]  ;;  %v424_v62 = vld [vmem:[#allocation4 + $0xf8] sm:$0xff]  ;;  %v596_v1 = vld [vmem:[#allocation4 + $0x108] sm:$0xff] }
  0x61   : > { %1451 = vmatprep.subr.bf16.mxu0 %v1450_v21  ;;  %1479 = vmatprep.subr.bf16.mxu1 %v1478_v32  ;;  %v1494_v63 = vpack.c.bf16 %v424_v62, %v423_v61  ;;  %v597_v2 = vld [vmem:[#allocation4 + $0x110] sm:$0xff]  ;;  %v1498_v3 = vpack.c.bf16 %v596_v1, %v595_v0  ;;  %v598_v4 = vld [vmem:[#allocation4 + $0x118] sm:$0xff]  ;;  %v599_v6 = vld [vmem:[#allocation4 + $0x120] sm:$0xff] }
  0x62   : > { %v1502_v5 = vpack.c.bf16 %v598_v4, %v597_v2  ;;  %v600_v7 = vld [vmem:[#allocation4 + $0x128] sm:$0xff]  ;;  %v601_v9 = vld [vmem:[#allocation4 + $0x130] sm:$0xff]  ;;  %v602_v10 = vld [vmem:[#allocation4 + $0x138] sm:$0xff] }
  0x63   : > { %v1506_v8 = vpack.c.bf16 %v600_v7, %v599_v6  ;;  %v1510_v11 = vpack.c.bf16 %v602_v10, %v601_v9  ;;  %v603_v12 = vld [vmem:[#allocation4 + $0x140] sm:$0xff]  ;;  %v604_v13 = vld [vmem:[#allocation4 + $0x148] sm:$0xff]  ;;  %v605_v15 = vld [vmem:[#allocation4 + $0x150] sm:$0xff] }
  0x64   : > { %1453 = vmatpush3.bf16.msra.mxu0 %v1450_v21  ;;  %1481 = vmatpush3.bf16.msra.mxu1 %v1478_v32  ;;  %v1514_v14 = vpack.c.bf16 %v604_v13, %v603_v12  ;;  %v606_v16 = vld [vmem:[#allocation4 + $0x158] sm:$0xff]  ;;  %v607_v18 = vld [vmem:[#allocation4 + $0x160] sm:$0xff]  ;;  %v608_v19 = vld [vmem:[#allocation4 + $0x168] sm:$0xff] }
  0x65   : > { %1455 = vmatprep.subr.bf16.mxu0 %v1454_v27  ;;  %1483 = vmatprep.subr.bf16.mxu1 %v1482_v38  ;;  %v1518_v17 = vpack.c.bf16 %v606_v16, %v605_v15  ;;  %v1522_v20 = vpack.c.bf16 %v608_v19, %v607_v18  ;;  %v1072_v21 = vld [vmem:[%s1937_s2] ss:$0 sm:$0xff]  ;;  %v609_v6 = vld [vmem:[#allocation4 + $0x170] sm:$0xff]  ;;  %v610_v7 = vld [vmem:[#allocation4 + $0x178] sm:$0xff] }
  0x66   : > { %v781_v9 = vld [vmem:[#allocation4 + $0x180] sm:$0xff]  ;;  %v782_v10 = vld [vmem:[#allocation4 + $0x188] sm:$0xff]  ;;  %v784_v13 = vld [vmem:[#allocation4 + $0x198] sm:$0xff] }
  0x67   : > { %v1530_v12 = vpack.c.bf16 %v782_v10, %v781_v9  ;;  %v785_v15 = vld [vmem:[#allocation4 + $0x1a0] sm:$0xff]  ;;  %v786_v16 = vld [vmem:[#allocation4 + $0x1a8] sm:$0xff]  ;;  %v787_v18 = vld [vmem:[#allocation4 + $0x1b0] sm:$0xff] }
  0x68   : > { %1457 = vmatpush3.bf16.msra.mxu0 %v1454_v27  ;;  %1485 = vmatpush3.bf16.msra.mxu1 %v1482_v38  ;;  %v788_v19 = vld [vmem:[#allocation4 + $0x1b8] sm:$0xff] }
  0x69   : > { %1459 = vmatprep.subr.bf16.mxu0 %v1458_v33  ;;  %1487 = vmatprep.subr.bf16.mxu1 %v1486_v42 }
  0x6c   : > { %1461 = vmatpush3.bf16.msra.mxu0 %v1458_v33  ;;  %1489 = vmatpush3.bf16.msra.mxu1 %v1486_v42 }
  0x6d   : > { %1463 = vmatprep.subr.bf16.mxu0 %v1462_v39  ;;  %1491 = vmatprep.subr.bf16.mxu1 %v1490_v46 }
  0x70   : > { %1465 = vmatpush3.bf16.msra.mxu0 %v1462_v39  ;;  %1493 = vmatpush3.bf16.msra.mxu1 %v1490_v46 }
  0x71   : > { %1495 = vmatprep.subr.bf16.mxu1 %v1494_v63  ;;  %1499 = vmatprep.subr.bf16.mxu0 %v1498_v3 }
  0x73   : > { %1243 = vmatmul.mubr.f32.vlgmr.msra.gmra.mrb[0].mxu0 %v209_v45 }
  0x74   : > { %1245 = vmatprep.mubr.f32.mxu0 %v210_v47  ;;  %1497 = vmatpush3.bf16.msra.mxu1 %v1494_v63 }
  0x75   : > { %1501 = vmatpush3.bf16.msra.mxu0 %v1498_v3  ;;  %1531 = vmatprep.subr.bf16.mxu1 %v1530_v12 }
  0x76   : > { %1503 = vmatprep.subr.bf16.mxu0 %v1502_v5 }
  0x77   : > { %1246 = vmatmul.mubr.f32.gmra.mrb[2].mxu0 %v211_v48 }
  0x78   : > { %1248 = vmatprep.mubr.f32.mxu0 %v212_v49 }
  0x79   : > { %1505 = vmatpush3.bf16.msra.mxu0 %v1502_v5 }
  0x7a   : > { %1507 = vmatprep.subr.bf16.mxu0 %v1506_v8 }
  0x7b   : > { %1249 = vmatmul.mubr.f32.gmra.mrb[4].mxu0 %v213_v50 }
  0x7c   : > { %1251 = vmatprep.mubr.f32.mxu0 %v214_v51 }
  0x7d   : > { %1509 = vmatpush3.bf16.msra.mxu0 %v1506_v8  ;;  %v1526_v8 = vpack.c.bf16 %v610_v7, %v609_v6 }
  0x7e   : > { %1511 = vmatprep.subr.bf16.mxu0 %v1510_v11 }
  0x7f   : > { %1252 = vmatmul.mubr.f32.gmra.mrb[6].mxu0 %v215_v52 }
  0x80   : > { %1254 = vmatprep.mubr.f32.mxu0 %v216_v53 }
  0x81   : > { %1513 = vmatpush3.bf16.msra.mxu0 %v1510_v11  ;;  %v783_v11 = vld [vmem:[#allocation4 + $0x190] sm:$0xff] }
  0x82   : > { %1515 = vmatprep.subr.bf16.mxu0 %v1514_v14 }
  0x83   : > { %1255 = vmatmul.mubr.f32.gmra.mrb[8].mxu0 %v217_v54 }
  0x84   : > { %1257 = vmatprep.mubr.f32.mxu0 %v218_v55 }
  0x85   : > { %1517 = vmatpush3.bf16.msra.mxu0 %v1514_v14  ;;  %v1534_v14 = vpack.c.bf16 %v784_v13, %v783_v11 }
  0x86   : > { %1519 = vmatprep.subr.bf16.mxu0 %v1518_v17 }
  0x87   : > { %1258 = vmatmul.mubr.f32.gmra.mrb[10].mxu0 %v219_v56 }
  0x88   : > { %1260 = vmatprep.mubr.f32.mxu0 %v220_v57 }
  0x89   : > { %1521 = vmatpush3.bf16.msra.mxu0 %v1518_v17  ;;  %v1538_v17 = vpack.c.bf16 %v786_v16, %v785_v15  ;;  %v795_v15 = vld [vmem:[#allocation4 + $0x1f0] sm:$0xff]  ;;  %v796_v16 = vld [vmem:[#allocation4 + $0x1f8] sm:$0xff] }
  0x8a   : > { %1523 = vmatprep.subr.bf16.mxu0 %v1522_v20 }
  0x8b   : > { %1261 = vmatmul.mubr.f32.gmra.mrb[12].mxu0 %v221_v58 }
  0x8c   : > { %1263 = vmatprep.mubr.f32.mxu0 %v222_v59 }
  0x8d   : > { %1525 = vmatpush3.bf16.msra.mxu0 %v1522_v20  ;;  %v1542_v20 = vpack.c.bf16 %v788_v19, %v787_v18  ;;  %v1076_v18 = vld [vmem:[%s1937_s2 + $0x2] ss:$0 sm:$0xff] }
  0x8e   : > { %1527 = vmatprep.subr.bf16.mxu0 %v1526_v8 }
  0x8f   : > { %1264 = vmatmul.mubr.f32.gmra.mrb[14].mxu0 %v223_v60 }
  0x91   : > { %1529 = vmatpush3.bf16.msra.mxu0 %v1526_v8 }
 0x146   : > { %v1244_v22 = vpop.f32.mrb[0].mxu0 }
 0x147   : > { %v319_v23 = vadd.f32 %v1244_v22, %v1072_v21  ;;  %v313_v24 = vpop.f32.mrb[1].mxu0  ;;  %v790_v22 = vld [vmem:[#allocation4 + $0x1c8] sm:$0xff] }
 0x148   : > { %v314_v25 = vadd.f32 %v1072_v21, %v313_v24  ;;  %v791_v24 = vld [vmem:[#allocation4 + $0x1d0] sm:$0xff] }
 0x149   : > { %v393_v28 = vmax.f32 %v319_v23, 0.0 }
 0x14a   : > { %v1247_v26 = vpop.f32.mrb[2].mxu0  ;;  %v392_v27 = vmax.f32 %v314_v25, 0.0  ;;  %v792_v25 = vld [vmem:[#allocation4 + $0x1d8] sm:$0xff] }
 0x14b   : > { %v329_v29 = vadd.f32 %v1247_v26, %v1072_v21  ;;  %v323_v30 = vpop.f32.mrb[3].mxu0  ;;  %v1550_v26 = vpack.c.bf16 %v792_v25, %v791_v24 }
 0x14c   : > { %v324_v31 = vadd.f32 %v1072_v21, %v323_v30  ;;  %1298 = vmatprep.mubr.f32.mxu1 %v392_v27  ;;  %v793_v27 = vld [vmem:[#allocation4 + $0x1e0] sm:$0xff] }
 0x14d   : > { %1299 = vmatmul.mubr.f32.vlgmr.msra.gmra.mrb[0].mxu1 %v393_v28  ;;  %v395_v34 = vmax.f32 %v329_v29, 0.0  ;;  %v794_v28 = vld [vmem:[#allocation4 + $0x1e8] sm:$0xff]  ;;  %v1074_v30 = vld [vmem:[%s1937_s2 + $0x1] ss:$0 sm:$0xff] }
 0x14e   : > { %v394_v32 = vmax.f32 %v324_v31, 0.0  ;;  %v1250_v33 = vpop.f32.mrb[4].mxu0  ;;  %1533 = vmatpush3.bf16.msra.mxu1 %v1530_v12  ;;  %v1554_v29 = vpack.c.bf16 %v794_v28, %v793_v27 }
 0x14f   : > { %v339_v35 = vadd.f32 %v1250_v33, %v1072_v21  ;;  %v333_v36 = vpop.f32.mrb[5].mxu0  ;;  %1535 = vmatprep.subr.bf16.mxu1 %v1534_v14 }
 0x150   : > { %v334_v37 = vadd.f32 %v1072_v21, %v333_v36  ;;  %1301 = vmatprep.mubr.f32.mxu1 %v394_v32 }
 0x151   : > { %1302 = vmatmul.mubr.f32.gmra.mrb[2].mxu1 %v395_v34  ;;  %v397_v40 = vmax.f32 %v339_v35, 0.0 }
 0x152   : > { %v396_v38 = vmax.f32 %v334_v37, 0.0  ;;  %v1253_v39 = vpop.f32.mrb[6].mxu0  ;;  %1537 = vmatpush3.bf16.msra.mxu1 %v1534_v14 }
 0x153   : > { %v349_v41 = vadd.f32 %v1253_v39, %v1072_v21  ;;  %v343_v42 = vpop.f32.mrb[7].mxu0  ;;  %1539 = vmatprep.subr.bf16.mxu1 %v1538_v17 }
 0x154   : > { %v344_v43 = vadd.f32 %v1072_v21, %v343_v42  ;;  %1304 = vmatprep.mubr.f32.mxu1 %v396_v38 }
 0x155   : > { %1305 = vmatmul.mubr.f32.gmra.mrb[4].mxu1 %v397_v40  ;;  %v399_v46 = vmax.f32 %v349_v41, 0.0 }
 0x156   : > { %v398_v44 = vmax.f32 %v344_v43, 0.0  ;;  %v1256_v45 = vpop.f32.mrb[8].mxu0  ;;  %1541 = vmatpush3.bf16.msra.mxu1 %v1538_v17  ;;  %v1558_v17 = vpack.c.bf16 %v796_v16, %v795_v15 }
 0x157   : > { %v359_v47 = vadd.f32 %v1256_v45, %v1072_v21  ;;  %v353_v48 = vpop.f32.mrb[9].mxu0  ;;  %1543 = vmatprep.subr.bf16.mxu1 %v1542_v20 }
 0x158   : > { %v354_v49 = vadd.f32 %v1072_v21, %v353_v48  ;;  %1307 = vmatprep.mubr.f32.mxu1 %v398_v44 }
 0x159   : > { %1308 = vmatmul.mubr.f32.gmra.mrb[6].mxu1 %v399_v46  ;;  %v401_v52 = vmax.f32 %v359_v47, 0.0 }
 0x15a   : > { %v400_v50 = vmax.f32 %v354_v49, 0.0  ;;  %v1259_v51 = vpop.f32.mrb[10].mxu0  ;;  %1545 = vmatpush3.bf16.msra.mxu1 %v1542_v20 }
 0x15b   : > { %v369_v53 = vadd.f32 %v1259_v51, %v1072_v21  ;;  %v363_v54 = vpop.f32.mrb[11].mxu0 }
 0x15c   : > { %v364_v55 = vadd.f32 %v1072_v21, %v363_v54  ;;  %1310 = vmatprep.mubr.f32.mxu1 %v400_v50 }
 0x15d   : > { %1311 = vmatmul.mubr.f32.gmra.mrb[8].mxu1 %v401_v52  ;;  %v403_v58 = vmax.f32 %v369_v53, 0.0 }
 0x15e   : > { %v402_v56 = vmax.f32 %v364_v55, 0.0  ;;  %v1262_v57 = vpop.f32.mrb[12].mxu0 }
 0x15f   : > { %v379_v59 = vadd.f32 %v1262_v57, %v1072_v21  ;;  %v373_v60 = vpop.f32.mrb[13].mxu0 }
 0x160   : > { %v374_v61 = vadd.f32 %v1072_v21, %v373_v60  ;;  %1313 = vmatprep.mubr.f32.mxu1 %v402_v56 }
 0x161   : > { %1314 = vmatmul.mubr.f32.gmra.mrb[10].mxu1 %v403_v58  ;;  %v405_v0 = vmax.f32 %v379_v59, 0.0 }
 0x162   : > { %v404_v62 = vmax.f32 %v374_v61, 0.0  ;;  %v1265_v63 = vpop.f32.mrb[14].mxu0 }
 0x163   : > { %v389_v1 = vadd.f32 %v1265_v63, %v1072_v21  ;;  %v383_v2 = vpop.f32.mrb[15].mxu0 }
 0x164   : > { %v384_v3 = vadd.f32 %v1072_v21, %v383_v2  ;;  %1316 = vmatprep.mubr.f32.mxu1 %v404_v62  ;;  %v789_v21 = vld [vmem:[#allocation4 + $0x1c0] sm:$0xff] }
 0x165   : > { %1317 = vmatmul.mubr.f32.gmra.mrb[12].mxu1 %v405_v0  ;;  %v407_v5 = vmax.f32 %v389_v1, 0.0  ;;  %v1546_v23 = vpack.c.bf16 %v790_v22, %v789_v21 }
 0x166   : > { %v406_v4 = vmax.f32 %v384_v3, 0.0 }
 0x167   : > { %1547 = vmatprep.subr.bf16.mxu1 %v1546_v23 }
 0x168   : > { %1319 = vmatprep.mubr.f32.mxu1 %v406_v4  ;;  %1549 = vmatpush3.bf16.msra.mxu1 %v1546_v23 }
 0x169   : > { %1320 = vmatmul.mubr.f32.gmra.mrb[14].mxu1 %v407_v5  ;;  %1551 = vmatprep.subr.bf16.mxu1 %v1550_v26 }
 0x16c   : > { %1553 = vmatpush3.bf16.msra.mxu1 %v1550_v26 }
 0x16d   : > { %1555 = vmatprep.subr.bf16.mxu1 %v1554_v29 }
 0x170   : > { %1557 = vmatpush3.bf16.msra.mxu1 %v1554_v29 }
 0x171   : > { %1559 = vmatprep.subr.bf16.mxu1 %v1558_v17 }
 0x174   : > { %1561 = vmatpush3.bf16.msra.mxu1 %v1558_v17 }
 0x220   : > { %v1300_v31 = vpop.f32.mrb[0].mxu1 }
 0x221   : > { %v505_v32 = vadd.f32 %v1300_v31, %v1074_v30  ;;  %v499_v33 = vpop.f32.mrb[1].mxu1 }
 0x222   : > { %v500_v34 = vadd.f32 %v1074_v30, %v499_v33 }
 0x223   : > { %v579_v37 = vmax.f32 %v505_v32, 0.0 }
 0x224   : > { %v578_v35 = vmax.f32 %v500_v34, 0.0  ;;  %v1303_v36 = vpop.f32.mrb[2].mxu1 }
 0x225   : > { %v515_v38 = vadd.f32 %v1303_v36, %v1074_v30  ;;  %v509_v39 = vpop.f32.mrb[3].mxu1 }
 0x226   : > { %v510_v40 = vadd.f32 %v1074_v30, %v509_v39  ;;  %1354 = vmatprep.mubr.f32.mxu0 %v578_v35 }
 0x227   : > { %1355 = vmatmul.mubr.f32.vlgmr.msra.gmra.mrb[16].mxu0 %v579_v37  ;;  %v581_v43 = vmax.f32 %v515_v38, 0.0 }
 0x228   : > { %v580_v41 = vmax.f32 %v510_v40, 0.0  ;;  %v1306_v42 = vpop.f32.mrb[4].mxu1 }
 0x229   : > { %v525_v44 = vadd.f32 %v1306_v42, %v1074_v30  ;;  %v519_v45 = vpop.f32.mrb[5].mxu1 }
 0x22a   : > { %v520_v46 = vadd.f32 %v1074_v30, %v519_v45  ;;  %1357 = vmatprep.mubr.f32.mxu0 %v580_v41 }
 0x22b   : > { %1358 = vmatmul.mubr.f32.gmra.mrb[18].mxu0 %v581_v43  ;;  %v583_v49 = vmax.f32 %v525_v44, 0.0 }
 0x22c   : > { %v582_v47 = vmax.f32 %v520_v46, 0.0  ;;  %v1309_v48 = vpop.f32.mrb[6].mxu1 }
 0x22d   : > { %v535_v50 = vadd.f32 %v1309_v48, %v1074_v30  ;;  %v529_v51 = vpop.f32.mrb[7].mxu1 }
 0x22e   : > { %v530_v52 = vadd.f32 %v1074_v30, %v529_v51  ;;  %1360 = vmatprep.mubr.f32.mxu0 %v582_v47 }
 0x22f   : > { %1361 = vmatmul.mubr.f32.gmra.mrb[20].mxu0 %v583_v49  ;;  %v585_v55 = vmax.f32 %v535_v50, 0.0 }
 0x230   : > { %v584_v53 = vmax.f32 %v530_v52, 0.0  ;;  %v1312_v54 = vpop.f32.mrb[8].mxu1 }
 0x231   : > { %v545_v56 = vadd.f32 %v1312_v54, %v1074_v30  ;;  %v539_v57 = vpop.f32.mrb[9].mxu1 }
 0x232   : > { %v540_v58 = vadd.f32 %v1074_v30, %v539_v57  ;;  %1363 = vmatprep.mubr.f32.mxu0 %v584_v53 }
 0x233   : > { %1364 = vmatmul.mubr.f32.gmra.mrb[22].mxu0 %v585_v55  ;;  %v587_v61 = vmax.f32 %v545_v56, 0.0 }
 0x234   : > { %v586_v59 = vmax.f32 %v540_v58, 0.0  ;;  %v1315_v60 = vpop.f32.mrb[10].mxu1 }
 0x235   : > { %v555_v62 = vadd.f32 %v1315_v60, %v1074_v30  ;;  %v549_v63 = vpop.f32.mrb[11].mxu1 }
 0x236   : > { %v550_v0 = vadd.f32 %v1074_v30, %v549_v63  ;;  %1366 = vmatprep.mubr.f32.mxu0 %v586_v59 }
 0x237   : > { %1367 = vmatmul.mubr.f32.gmra.mrb[24].mxu0 %v587_v61  ;;  %v589_v3 = vmax.f32 %v555_v62, 0.0 }
 0x238   : > { %v588_v1 = vmax.f32 %v550_v0, 0.0  ;;  %v1318_v2 = vpop.f32.mrb[12].mxu1 }
 0x239   : > { %v565_v4 = vadd.f32 %v1318_v2, %v1074_v30  ;;  %v559_v5 = vpop.f32.mrb[13].mxu1 }
 0x23a   : > { %v560_v6 = vadd.f32 %v1074_v30, %v559_v5  ;;  %1369 = vmatprep.mubr.f32.mxu0 %v588_v1 }
 0x23b   : > { %1370 = vmatmul.mubr.f32.gmra.mrb[26].mxu0 %v589_v3  ;;  %v591_v9 = vmax.f32 %v565_v4, 0.0  ;;  %v1078_v3 = vld [vmem:[%s1937_s2 + $0x3] ss:$0 sm:$0xff] }
 0x23c   : > { %v590_v7 = vmax.f32 %v560_v6, 0.0  ;;  %v1321_v8 = vpop.f32.mrb[14].mxu1 }
 0x23d   : > { %v575_v10 = vadd.f32 %v1321_v8, %v1074_v30  ;;  %v569_v11 = vpop.f32.mrb[15].mxu1 }
 0x23e   : > { %v570_v12 = vadd.f32 %v1074_v30, %v569_v11  ;;  %1372 = vmatprep.mubr.f32.mxu0 %v590_v7 }
 0x23f   : > { %1373 = vmatmul.mubr.f32.gmra.mrb[28].mxu0 %v591_v9  ;;  %v593_v14 = vmax.f32 %v575_v10, 0.0 }
 0x240   : > { %v592_v13 = vmax.f32 %v570_v12, 0.0 }
 0x242   : > { %1375 = vmatprep.mubr.f32.mxu0 %v592_v13 }
 0x243   : > { %1376 = vmatmul.mubr.f32.gmra.mrb[30].mxu0 %v593_v14 }
 0x2fa   : > { %v1356_v19 = vpop.f32.mrb[16].mxu0 }
 0x2fb   : > { %v691_v20 = vadd.f32 %v1356_v19, %v1076_v18  ;;  %v685_v21 = vpop.f32.mrb[17].mxu0 }
 0x2fc   : > { %v686_v22 = vadd.f32 %v1076_v18, %v685_v21 }
 0x2fd   : > { %v765_v25 = vmax.f32 %v691_v20, 0.0 }
 0x2fe   : > { %v764_v23 = vmax.f32 %v686_v22, 0.0  ;;  %v1359_v24 = vpop.f32.mrb[18].mxu0 }
 0x2ff   : > { %v701_v26 = vadd.f32 %v1359_v24, %v1076_v18  ;;  %v695_v27 = vpop.f32.mrb[19].mxu0 }
 0x300   : > { %v696_v28 = vadd.f32 %v1076_v18, %v695_v27  ;;  %1410 = vmatprep.mubr.f32.mxu1 %v764_v23 }
 0x301   : > { %1411 = vmatmul.mubr.f32.vlgmr.msra.gmra.mrb[16].mxu1 %v765_v25  ;;  %v767_v31 = vmax.f32 %v701_v26, 0.0 }
 0x302   : > { %v766_v29 = vmax.f32 %v696_v28, 0.0  ;;  %v1362_v30 = vpop.f32.mrb[20].mxu0 }
 0x303   : > { %v711_v32 = vadd.f32 %v1362_v30, %v1076_v18  ;;  %v705_v33 = vpop.f32.mrb[21].mxu0 }
 0x304   : > { %v706_v34 = vadd.f32 %v1076_v18, %v705_v33  ;;  %1413 = vmatprep.mubr.f32.mxu1 %v766_v29 }
 0x305   : > { %1414 = vmatmul.mubr.f32.gmra.mrb[18].mxu1 %v767_v31  ;;  %v769_v37 = vmax.f32 %v711_v32, 0.0 }
 0x306   : > { %v768_v35 = vmax.f32 %v706_v34, 0.0  ;;  %v1365_v36 = vpop.f32.mrb[22].mxu0 }
 0x307   : > { %v721_v38 = vadd.f32 %v1365_v36, %v1076_v18  ;;  %v715_v39 = vpop.f32.mrb[23].mxu0 }
 0x308   : > { %v716_v40 = vadd.f32 %v1076_v18, %v715_v39  ;;  %1416 = vmatprep.mubr.f32.mxu1 %v768_v35 }
 0x309   : > { %1417 = vmatmul.mubr.f32.gmra.mrb[20].mxu1 %v769_v37  ;;  %v771_v43 = vmax.f32 %v721_v38, 0.0 }
 0x30a   : > { %v770_v41 = vmax.f32 %v716_v40, 0.0  ;;  %v1368_v42 = vpop.f32.mrb[24].mxu0 }
 0x30b   : > { %v731_v44 = vadd.f32 %v1368_v42, %v1076_v18  ;;  %v725_v45 = vpop.f32.mrb[25].mxu0 }
 0x30c   : > { %v726_v46 = vadd.f32 %v1076_v18, %v725_v45  ;;  %1419 = vmatprep.mubr.f32.mxu1 %v770_v41 }
 0x30d   : > { %1420 = vmatmul.mubr.f32.gmra.mrb[22].mxu1 %v771_v43  ;;  %v773_v49 = vmax.f32 %v731_v44, 0.0 }
 0x30e   : > { %v772_v47 = vmax.f32 %v726_v46, 0.0  ;;  %v1371_v48 = vpop.f32.mrb[26].mxu0 }
 0x30f   : > { %v741_v50 = vadd.f32 %v1371_v48, %v1076_v18  ;;  %v735_v51 = vpop.f32.mrb[27].mxu0 }
 0x310   : > { %v736_v52 = vadd.f32 %v1076_v18, %v735_v51  ;;  %1422 = vmatprep.mubr.f32.mxu1 %v772_v47 }
 0x311   : > { %1423 = vmatmul.mubr.f32.gmra.mrb[24].mxu1 %v773_v49  ;;  %v775_v55 = vmax.f32 %v741_v50, 0.0 }
 0x312   : > { %v774_v53 = vmax.f32 %v736_v52, 0.0  ;;  %v1374_v54 = vpop.f32.mrb[28].mxu0 }
 0x313   : > { %v751_v56 = vadd.f32 %v1374_v54, %v1076_v18  ;;  %v745_v57 = vpop.f32.mrb[29].mxu0 }
 0x314   : > { %v746_v58 = vadd.f32 %v1076_v18, %v745_v57  ;;  %1425 = vmatprep.mubr.f32.mxu1 %v774_v53 }
 0x315   : > { %1426 = vmatmul.mubr.f32.gmra.mrb[26].mxu1 %v775_v55  ;;  %v777_v61 = vmax.f32 %v751_v56, 0.0 }
 0x316   : > { %v776_v59 = vmax.f32 %v746_v58, 0.0  ;;  %v1377_v60 = vpop.f32.mrb[30].mxu0 }
 0x317   : > { %v761_v62 = vadd.f32 %v1377_v60, %v1076_v18  ;;  %v755_v63 = vpop.f32.mrb[31].mxu0 }
 0x318   : > { %v756_v0 = vadd.f32 %v1076_v18, %v755_v63  ;;  %1428 = vmatprep.mubr.f32.mxu1 %v776_v59 }
 0x319   : > { %1429 = vmatmul.mubr.f32.gmra.mrb[28].mxu1 %v777_v61  ;;  %v779_v2 = vmax.f32 %v761_v62, 0.0 }
 0x31a   : > { %v778_v1 = vmax.f32 %v756_v0, 0.0 }
 0x31c   : > { %1431 = vmatprep.mubr.f32.mxu1 %v778_v1 }
 0x31d   : > { %1432 = vmatmul.mubr.f32.gmra.mrb[30].mxu1 %v779_v2 }
 0x3d4   : > { %v1412_v4 = vpop.f32.mrb[16].mxu1 }
 0x3d5   : > { %v877_v5 = vadd.f32 %v1412_v4, %v1078_v3  ;;  %v871_v6 = vpop.f32.mrb[17].mxu1 }
 0x3d6   : > { %v872_v7 = vadd.f32 %v1078_v3, %v871_v6 }
 0x3d7   : > { %v951_v8 = vmax.f32 %v877_v5, 0.0 }
 0x3d8   : > { %v950_v9 = vmax.f32 %v872_v7, 0.0  ;;  %v1415_v10 = vpop.f32.mrb[18].mxu1 }
 0x3d9   : > { %967 = vst [vmem:[%s1904_s10 + $0x8] sm:$0xff] %v951_v8  ;;  %v887_v11 = vadd.f32 %v1415_v10, %v1078_v3  ;;  %v881_v12 = vpop.f32.mrb[19].mxu1 }
 0x3da   : > { %966 = vst [vmem:[%s1904_s10] sm:$0xff] %v950_v9  ;;  %v882_v13 = vadd.f32 %v1078_v3, %v881_v12 }
 0x3db   : > { %v953_v14 = vmax.f32 %v887_v11, 0.0 }
 0x3dc   : > { %v952_v15 = vmax.f32 %v882_v13, 0.0  ;;  %v1418_v16 = vpop.f32.mrb[20].mxu1 }
 0x3dd   : > { %969 = vst [vmem:[%s1904_s10 + $0x18] sm:$0xff] %v953_v14  ;;  %v897_v17 = vadd.f32 %v1418_v16, %v1078_v3  ;;  %v891_v18 = vpop.f32.mrb[21].mxu1 }
 0x3de   : > { %968 = vst [vmem:[%s1904_s10 + $0x10] sm:$0xff] %v952_v15  ;;  %v892_v19 = vadd.f32 %v1078_v3, %v891_v18 }
 0x3df   : > { %v955_v20 = vmax.f32 %v897_v17, 0.0 }
 0x3e0   : > { %v954_v21 = vmax.f32 %v892_v19, 0.0  ;;  %v1421_v22 = vpop.f32.mrb[22].mxu1 }
 0x3e1   : > { %971 = vst [vmem:[%s1904_s10 + $0x28] sm:$0xff] %v955_v20  ;;  %v907_v23 = vadd.f32 %v1421_v22, %v1078_v3  ;;  %v901_v24 = vpop.f32.mrb[23].mxu1 }
 0x3e2   : > { %970 = vst [vmem:[%s1904_s10 + $0x20] sm:$0xff] %v954_v21  ;;  %v902_v25 = vadd.f32 %v1078_v3, %v901_v24 }
 0x3e3   : > { %v957_v26 = vmax.f32 %v907_v23, 0.0 }
 0x3e4   : > { %v956_v27 = vmax.f32 %v902_v25, 0.0  ;;  %v1424_v28 = vpop.f32.mrb[24].mxu1 }
 0x3e5   : > { %973 = vst [vmem:[%s1904_s10 + $0x38] sm:$0xff] %v957_v26  ;;  %v917_v29 = vadd.f32 %v1424_v28, %v1078_v3  ;;  %v911_v30 = vpop.f32.mrb[25].mxu1 }
 0x3e6   : > { %972 = vst [vmem:[%s1904_s10 + $0x30] sm:$0xff] %v956_v27  ;;  %v912_v31 = vadd.f32 %v1078_v3, %v911_v30 }
 0x3e7   : > { %v959_v32 = vmax.f32 %v917_v29, 0.0 }
 0x3e8   : > { %v958_v33 = vmax.f32 %v912_v31, 0.0  ;;  %v1427_v34 = vpop.f32.mrb[26].mxu1 }
 0x3e9   : > { %975 = vst [vmem:[%s1904_s10 + $0x48] sm:$0xff] %v959_v32  ;;  %v927_v35 = vadd.f32 %v1427_v34, %v1078_v3  ;;  %v921_v36 = vpop.f32.mrb[27].mxu1 }
 0x3ea   : > { %974 = vst [vmem:[%s1904_s10 + $0x40] sm:$0xff] %v958_v33  ;;  %v922_v37 = vadd.f32 %v1078_v3, %v921_v36 }
 0x3eb   : > { %v961_v38 = vmax.f32 %v927_v35, 0.0 }
 0x3ec   : > { %v960_v39 = vmax.f32 %v922_v37, 0.0  ;;  %v1430_v40 = vpop.f32.mrb[28].mxu1 }
 0x3ed   : > { %977 = vst [vmem:[%s1904_s10 + $0x58] sm:$0xff] %v961_v38  ;;  %v937_v41 = vadd.f32 %v1430_v40, %v1078_v3  ;;  %v931_v42 = vpop.f32.mrb[29].mxu1 }
 0x3ee   : > { %976 = vst [vmem:[%s1904_s10 + $0x50] sm:$0xff] %v960_v39  ;;  %v932_v43 = vadd.f32 %v1078_v3, %v931_v42 }
 0x3ef   : > { %v963_v44 = vmax.f32 %v937_v41, 0.0 }
 0x3f0   : > { %v962_v45 = vmax.f32 %v932_v43, 0.0  ;;  %v1433_v46 = vpop.f32.mrb[30].mxu1 }
 0x3f1   : > { %979 = vst [vmem:[%s1904_s10 + $0x68] sm:$0xff] %v963_v44  ;;  %v947_v47 = vadd.f32 %v1433_v46, %v1078_v3  ;;  %v941_v48 = vpop.f32.mrb[31].mxu1 }
 0x3f2   : > { %978 = vst [vmem:[%s1904_s10 + $0x60] sm:$0xff] %v962_v45  ;;  %v942_v49 = vadd.f32 %v1078_v3, %v941_v48 }
 0x3f3   : > { %v965_v50 = vmax.f32 %v947_v47, 0.0 }
 0x3f4   : > { %v964_v51 = vmax.f32 %v942_v49, 0.0 }
 0x3f5   : > { %981 = vst [vmem:[%s1904_s10 + $0x78] sm:$0xff] %v965_v50 }
 0x3f6   : > { %980 = vst [vmem:[%s1904_s10 + $0x70] sm:$0xff] %v964_v51 }
 0x3f7 PF: > { %p14_p6 = scmp.ge.s32.totalorder %s1783_s23, 6   ;;  %s1951_s12 = smov %s1702_s13 }
 0x3f8   : > { %s1952_s13 = smov %s1706_s14  ;;  %s1953_s14 = smov %s1812_s11 }
 0x3f9   : > { %s1954_s15 = smov %s1783_s23  ;;  %16 = sbr.rel (!%p14_p6) target bundleno = 4 (0x4), region = 82 }
 0x400   :  { %1004 = vsyncpa [#allocation3], 1 }
 0x401   :  { %1006 = vsyncpa [#allocation3 + $0x1], 1 }
 0x402   :  { %1007 = vsyncpa [#allocation5], 1 }

</bundles_post_ra>
